<compile_context>
chip_gen: v5e
topology: v5e:2x2
jax: 0.10.0
libtpu: 0.0.40
codegen_flags: <defaults>
</compile_context>

<pallas_src>
import math

import jax
import jax.numpy as jnp
from jax import lax
from jax.experimental import pallas as pl
from jax.experimental.pallas import tpu as pltpu


def _head_kernel(x_ref, w_ref, cb_ref, clsw_ref, clsb_ref, o_ref, xs_ref):
    """One grid step processes TB batch elements.

    x_ref:    (TB, L, H)   f32  activation block (straight from HBM)
    w_ref:    (F, H, C)    bf16 conv weight, one (H, C) slice per tap
    cb_ref:   (1, C)       f32  conv bias
    clsw_ref: (2, C)       bf16 classifier weight (PyTorch layout)
    clsb_ref: (2, 1)       f32  classifier bias
    o_ref:    (2, TB*L)    f32  transposed, lane-dense output block
    xs_ref:   (TB, Lp, H)  bf16 VMEM scratch (zero-padded sequence)
    """
    TB, L, H = x_ref.shape
    F = w_ref.shape[0]
    C = w_ref.shape[2]
    Lp = xs_ref.shape[1]
    pad = (Lp - L) // 2

    # --- fused zero-pad + f32 -> bf16 cast (no extra wrapper HBM pass) -----
    zeros = jnp.zeros((TB, pad, H), dtype=xs_ref.dtype)
    xs_ref[:, :pad, :] = zeros
    xs_ref[:, pad + L:, :] = zeros
    xs_ref[:, pad:pad + L, :] = x_ref[...].astype(xs_ref.dtype)

    # --- conv: F accumulated (TB*L, H) x (H, C) dots ------------------------
    # (single batched M = TB*L contraction per tap; no (L, F*H) im2col temp)
    acc = jnp.zeros((TB * L, C), jnp.float32)
    for k in range(F):                                 # F in {3, 5}: static
        xk = xs_ref[:, k:k + L, :].reshape(TB * L, H)  # bf16
        acc = acc + jnp.dot(xk, w_ref[k], preferred_element_type=jnp.float32)

    # TODO(synk): dropout (applied before relu in the module) is identity at
    # inference time and is intentionally not implemented (no training use).
    h = jnp.maximum(acc + cb_ref[...], 0.0).astype(jnp.bfloat16)   # (TB*L, C)

    # --- classifier computed transposed: (2, C) x (C, TB*L) -----------------
    out_t = lax.dot_general(
        clsw_ref[...], h,
        dimension_numbers=(((1,), (1,)), ((), ())),
        preferred_element_type=jnp.float32)                        # (2, TB*L)
    o_ref[...] = out_t + clsb_ref[...]        # one dense, unmasked store


def _pick_batch_block(B, L, H, pad, budget_bytes=24 << 20, cap=64):
    """Largest divisor TB of B such that
       * double-buffered input/output blocks + scratch fit the VMEM budget,
       * the output block stays lane-dense: TB*L % 128 == 0, or TB == B
         (block == full array, which the (8,128) rule also allows)."""
    Lp = L + 2 * pad
    per_b = (2 * L * H * 4      # x block, f32, double-buffered
             + Lp * H * 2       # bf16 scratch
             + 2 * 2 * L * 4)   # output block, f32, double-buffered
    valid = [tb for tb in range(1, min(B, cap) + 1)
             if B % tb == 0 and (tb == B or (tb * L) % 128 == 0)]
    if not valid:
        valid = [B]
    fitting = [tb for tb in valid if tb * per_b <= budget_bytes]
    return max(fitting) if fitting else min(valid)


def text_conv_cls_head(x, conv_w, conv_b, cls_w, cls_b, *, filter_size=3):
    """Inference forward of TextConvolutionClassificationHead.

    x:      (B, L, H) f32 passage_hidden
    conv_w: (C, 1, F, H)  nn.Conv2d(1, C, (F, H), padding=(pad, 0)) weight
    conv_b: (C,)
    cls_w:  (2, C)        nn.Linear(C, 2) weight
    cls_b:  (2,)
    returns (B, L, 2) f32
    """
    assert filter_size in (3, 5), "filter_size only allows to be 3 and 5"
    B, L, H = x.shape
    C, _, F, Hw = conv_w.shape
    assert F == filter_size and Hw == H
    pad = 1 if filter_size == 3 else 2
    Lp = L + 2 * pad

    TB = _pick_batch_block(B, L, H, pad)
    grid = (B // TB,)

    # Tiny weight-side glue in plain JAX (negligible traffic):
    # conv_w (C,1,F,H) -> (F,H,C); MXU operands in bf16, f32 accumulation.
    w_fhc = jnp.transpose(conv_w[:, 0, :, :], (1, 2, 0)).astype(jnp.bfloat16)
    cb = conv_b.reshape(1, C).astype(jnp.float32)
    clsw = cls_w.astype(jnp.bfloat16)
    clsb = cls_b.reshape(2, 1).astype(jnp.float32)

    cost = pl.CostEstimate(
        flops=2 * B * L * F * H * C + 2 * B * L * C * 2,
        transcendentals=0,
        bytes_accessed=(B * L * H * 4 + 2 * B * L * 4
                        + F * H * C * 2 + 2 * C * 2 + C * 4 + 2 * 4))

    out_t = pl.pallas_call(
        _head_kernel,
        out_shape=jax.ShapeDtypeStruct((2, B * L), jnp.float32),
        grid_spec=pltpu.PrefetchScalarGridSpec(
            num_scalar_prefetch=0,
            grid=grid,
            in_specs=[
                pl.BlockSpec((TB, L, H), lambda b: (b, 0, 0)),   # x (f32)
                pl.BlockSpec((F, H, C), lambda b: (0, 0, 0)),    # conv weight
                pl.BlockSpec((1, C), lambda b: (0, 0)),          # conv bias
                pl.BlockSpec((2, C), lambda b: (0, 0)),          # cls weight
                pl.BlockSpec((2, 1), lambda b: (0, 0)),          # cls bias
            ],
            out_specs=pl.BlockSpec((2, TB * L), lambda b: (0, b)),
            scratch_shapes=[pltpu.VMEM((TB, Lp, H), jnp.bfloat16)],
        ),
        compiler_params=pltpu.CompilerParams(
            dimension_semantics=("parallel",),
            # <= 48 MiB: safe on v7x's 64 MiB physical VMEM, roomy on v5e/v6e.
            vmem_limit_bytes=48 * 1024 * 1024),
        cost_estimate=cost,
    )(x.astype(jnp.float32), w_fhc, cb, clsw, clsb)

    # Cheap XLA reshuffle back to the PyTorch (B, L, 2) output layout.
    return jnp.transpose(out_t.reshape(2, B, L), (1, 2, 0))


def _xavier_uniform(key, shape, fan_in, fan_out, gain):
    bound = gain * math.sqrt(6.0 / (fan_in + fan_out))
    return jax.random.uniform(key, shape, jnp.float32, -bound, bound)


if __name__ == "__main__":
    # Small shapes consistent with the module's forward:
    # passage_hidden: (batch, seq_len, hidden_dim)
    B, L, H = 2, 8, 32
    C, F = 8, 3              # out_channel, filter_size
    gain = 1.0 / math.sqrt(2.0)

    key = jax.random.PRNGKey(0)
    k_x, k_cw, k_cb, k_lw, k_lb = jax.random.split(key, 5)

    x = jax.random.normal(k_x, (B, L, H), jnp.float32)

    # nn.Conv2d(1, C, (F, H)): weight (C,1,F,H); xavier fan_in=F*H, fan_out=C*F*H.
    conv_w = _xavier_uniform(k_cw, (C, 1, F, H), 1 * F * H, C * F * H, gain)
    conv_b = jax.random.uniform(k_cb, (C,), jnp.float32,
                                -1.0 / math.sqrt(F * H), 1.0 / math.sqrt(F * H))
    # nn.Linear(C, 2): weight (2, C); xavier fan_in=C, fan_out=2.
    cls_w = _xavier_uniform(k_lw, (2, C), C, 2, gain)
    cls_b = jax.random.uniform(k_lb, (2,), jnp.float32,
                               -1.0 / math.sqrt(C), 1.0 / math.sqrt(C))

    out = text_conv_cls_head(x, conv_w, conv_b, cls_w, cls_b, filter_size=F)
    out = jax.block_until_ready(out)
    assert out.shape == (B, L, 2)

    pad = 1
    # Reference 1: same bf16 operands / f32 accumulation as the kernel (tight).
    x_pad = jnp.pad(x, ((0, 0), (pad, pad), (0, 0))).astype(jnp.bfloat16)
    w_fhc = jnp.transpose(conv_w[:, 0, :, :], (1, 2, 0)).astype(jnp.bfloat16)
    ref = jnp.zeros((B, L, C), jnp.float32)
    for k in range(F):
        ref = ref + jnp.einsum('blh,hc->blc', x_pad[:, k:k + L, :], w_fhc[k],
                               preferred_element_type=jnp.float32)
    ref = jnp.maximum(ref + conv_b[None, None, :], 0.0)
    ref = jnp.einsum('blc,oc->blo', ref.astype(jnp.bfloat16),
                     cls_w.astype(jnp.bfloat16),
                     preferred_element_type=jnp.float32) + cls_b[None, None, :]
    assert jnp.allclose(out, ref, atol=2e-3, rtol=2e-3), \
        float(jnp.max(jnp.abs(out - ref)))

    # Reference 2: pure f32 math (bf16 operands change numerics slightly,
    # hence the looser tolerance).
    x_pad32 = jnp.pad(x, ((0, 0), (pad, pad), (0, 0)))
    w32 = jnp.transpose(conv_w[:, 0, :, :], (1, 2, 0))
    ref32 = jnp.zeros((B, L, C), jnp.float32)
    for k in range(F):
        ref32 = ref32 + jnp.einsum('blh,hc->blc', x_pad32[:, k:k + L, :], w32[k])
    ref32 = jnp.maximum(ref32 + conv_b[None, None, :], 0.0)
    ref32 = jnp.einsum('blc,oc->blo', ref32, cls_w) + cls_b[None, None, :]
    assert jnp.allclose(out, ref32, atol=3e-2, rtol=3e-2), \
        float(jnp.max(jnp.abs(out - ref32)))

    print("KERNEL_OK")
</pallas_src>

<mosaic_0001>
module attributes {stable_mosaic.version = 11 : i64} {
  func.func @_head_kernel(%arg0: i32, %arg1: memref<2x8x32xf32, #tpu.memory_space<vmem>>, %arg2: memref<3x32x8xbf16, #tpu.memory_space<vmem>>, %arg3: memref<1x8xf32, #tpu.memory_space<vmem>>, %arg4: memref<2x8xbf16, #tpu.memory_space<vmem>>, %arg5: memref<2x1xf32, #tpu.memory_space<vmem>>, %arg6: memref<2x16xf32, #tpu.memory_space<vmem>>, %arg7: memref<2x10x32xbf16, #tpu.memory_space<vmem>>) attributes {dimension_semantics = [#tpu.dimension_semantics<parallel>], iteration_bounds = array<i64: 1>, scalar_prefetch = 0 : i64, scratch_operands = 1 : i64, tpu.core_type = #tpu.core_type<tc>, window_params = [{transform_indices = @transform_0, window_bounds = array<i64: 2, 8, 32>}, {pipeline_mode = #tpu.pipeline_mode<synchronous>, transform_indices = @transform_1, window_bounds = array<i64: 3, 32, 8>}, {pipeline_mode = #tpu.pipeline_mode<synchronous>, transform_indices = @transform_2, window_bounds = array<i64: 1, 8>}, {pipeline_mode = #tpu.pipeline_mode<synchronous>, transform_indices = @transform_3, window_bounds = array<i64: 2, 8>}, {pipeline_mode = #tpu.pipeline_mode<synchronous>, transform_indices = @transform_4, window_bounds = array<i64: 2, 1>}, {transform_indices = @transform_5, window_bounds = array<i64: 2, 16>}]} {
    %cst = arith.constant 0.000000e+00 : bf16
    %0 = vector.broadcast %cst : bf16 to vector<2x1x32xbf16>
    %c0 = arith.constant 0 : index
    %c0_0 = arith.constant 0 : index
    %c0_1 = arith.constant 0 : index
    %1 = vector.load %arg7[%c0, %c0_0, %c0_1] : memref<2x10x32xbf16, #tpu.memory_space<vmem>>, vector<2x1x32xbf16>
    tpu.vector_store %arg7[%c0, %c0_0, %c0_1], %0 {strides = array<i32>} : memref<2x10x32xbf16, #tpu.memory_space<vmem>>, vector<2x1x32xbf16>,
    %c0_2 = arith.constant 0 : index
    %c9 = arith.constant 9 : index
    %c0_3 = arith.constant 0 : index
    %2 = vector.load %arg7[%c0_2, %c9, %c0_3] : memref<2x10x32xbf16, #tpu.memory_space<vmem>>, vector<2x1x32xbf16>
    tpu.vector_store %arg7[%c0_2, %c9, %c0_3], %0 {strides = array<i32>} : memref<2x10x32xbf16, #tpu.memory_space<vmem>>, vector<2x1x32xbf16>,
    %c0_4 = arith.constant 0 : index
    %c0_5 = arith.constant 0 : index
    %c0_6 = arith.constant 0 : index
    %3 = vector.load %arg1[%c0_4, %c0_5, %c0_6] : memref<2x8x32xf32, #tpu.memory_space<vmem>>, vector<2x8x32xf32>
    %4 = arith.truncf %3 : vector<2x8x32xf32> to vector<2x8x32xbf16>
    %c0_7 = arith.constant 0 : index
    %c1 = arith.constant 1 : index
    %c0_8 = arith.constant 0 : index
    %5 = vector.load %arg7[%c0_7, %c1, %c0_8] : memref<2x10x32xbf16, #tpu.memory_space<vmem>>, vector<2x8x32xbf16>
    tpu.vector_store %arg7[%c0_7, %c1, %c0_8], %4 {strides = array<i32>} : memref<2x10x32xbf16, #tpu.memory_space<vmem>>, vector<2x8x32xbf16>,
    %cst_9 = arith.constant 0.000000e+00 : f32
    %6 = vector.broadcast %cst_9 : f32 to vector<16x8xf32>
    %c0_10 = arith.constant 0 : index
    %c0_11 = arith.constant 0 : index
    %c0_12 = arith.constant 0 : index
    %7 = vector.load %arg7[%c0_10, %c0_11, %c0_12] : memref<2x10x32xbf16, #tpu.memory_space<vmem>>, vector<2x8x32xbf16>
    %8 = vector.shape_cast %7 : vector<2x8x32xbf16> to vector<16x32xbf16>
    %c0_13 = arith.constant 0 : index
    %c0_14 = arith.constant 0 : index
    %c0_15 = arith.constant 0 : index
    %9 = vector.load %arg2[%c0_13, %c0_14, %c0_15] : memref<3x32x8xbf16, #tpu.memory_space<vmem>>, vector<1x32x8xbf16>
    %10 = vector.shape_cast %9 : vector<1x32x8xbf16> to vector<32x8xbf16>
    %cst_16 = arith.constant dense<0.000000e+00> : vector<16x8xf32>
    %11 = tpu.matmul %8, %10, %cst_16 {dimension_numbers = #tpu.dot_dimension_numbers<[1], [0], [0], [1], [0, 0, 1, 1], [], []>} : vector<16x32xbf16>, vector<32x8xbf16>, vector<16x8xf32> -> vector<16x8xf32>
    %12 = arith.addf %6, %11 : vector<16x8xf32>
    %c0_17 = arith.constant 0 : index
    %c1_18 = arith.constant 1 : index
    %c0_19 = arith.constant 0 : index
    %13 = vector.load %arg7[%c0_17, %c1_18, %c0_19] : memref<2x10x32xbf16, #tpu.memory_space<vmem>>, vector<2x8x32xbf16>
    %14 = vector.shape_cast %13 : vector<2x8x32xbf16> to vector<16x32xbf16>
    %c1_20 = arith.constant 1 : index
    %c0_21 = arith.constant 0 : index
    %c0_22 = arith.constant 0 : index
    %15 = vector.load %arg2[%c1_20, %c0_21, %c0_22] : memref<3x32x8xbf16, #tpu.memory_space<vmem>>, vector<1x32x8xbf16>
    %16 = vector.shape_cast %15 : vector<1x32x8xbf16> to vector<32x8xbf16>
    %cst_23 = arith.constant dense<0.000000e+00> : vector<16x8xf32>
    %17 = tpu.matmul %14, %16, %cst_23 {dimension_numbers = #tpu.dot_dimension_numbers<[1], [0], [0], [1], [0, 0, 1, 1], [], []>} : vector<16x32xbf16>, vector<32x8xbf16>, vector<16x8xf32> -> vector<16x8xf32>
    %18 = arith.addf %12, %17 : vector<16x8xf32>
    %c0_24 = arith.constant 0 : index
    %c2 = arith.constant 2 : index
    %c0_25 = arith.constant 0 : index
    %19 = vector.load %arg7[%c0_24, %c2, %c0_25] : memref<2x10x32xbf16, #tpu.memory_space<vmem>>, vector<2x8x32xbf16>
    %20 = vector.shape_cast %19 : vector<2x8x32xbf16> to vector<16x32xbf16>
    %c2_26 = arith.constant 2 : index
    %c0_27 = arith.constant 0 : index
    %c0_28 = arith.constant 0 : index
    %21 = vector.load %arg2[%c2_26, %c0_27, %c0_28] : memref<3x32x8xbf16, #tpu.memory_space<vmem>>, vector<1x32x8xbf16>
    %22 = vector.shape_cast %21 : vector<1x32x8xbf16> to vector<32x8xbf16>
    %cst_29 = arith.constant dense<0.000000e+00> : vector<16x8xf32>
    %23 = tpu.matmul %20, %22, %cst_29 {dimension_numbers = #tpu.dot_dimension_numbers<[1], [0], [0], [1], [0, 0, 1, 1], [], []>} : vector<16x32xbf16>, vector<32x8xbf16>, vector<16x8xf32> -> vector<16x8xf32>
    %24 = arith.addf %18, %23 : vector<16x8xf32>
    %c0_30 = arith.constant 0 : index
    %c0_31 = arith.constant 0 : index
    %25 = vector.load %arg3[%c0_30, %c0_31] : memref<1x8xf32, #tpu.memory_space<vmem>>, vector<1x8xf32>
    %26 = vector.broadcast %25 : vector<1x8xf32> to vector<16x8xf32>
    %27 = arith.addf %24, %26 : vector<16x8xf32>
    %cst_32 = arith.constant 0.000000e+00 : f32
    %28 = vector.broadcast %cst_32 : f32 to vector<16x8xf32>
    %29 = arith.maximumf %27, %28 : vector<16x8xf32>
    %30 = arith.truncf %29 : vector<16x8xf32> to vector<16x8xbf16>
    %c0_33 = arith.constant 0 : index
    %c0_34 = arith.constant 0 : index
    %31 = vector.load %arg4[%c0_33, %c0_34] : memref<2x8xbf16, #tpu.memory_space<vmem>>, vector<2x8xbf16>
    %cst_35 = arith.constant dense<0.000000e+00> : vector<2x16xf32>
    %32 = tpu.matmul %31, %30, %cst_35 {dimension_numbers = #tpu.dot_dimension_numbers<[1], [1], [0], [0], [0, 0, 1, 0], [], []>} : vector<2x8xbf16>, vector<16x8xbf16>, vector<2x16xf32> -> vector<2x16xf32>
    %c0_36 = arith.constant 0 : index
    %c0_37 = arith.constant 0 : index
    %33 = vector.load %arg5[%c0_36, %c0_37] : memref<2x1xf32, #tpu.memory_space<vmem>>, vector<2x1xf32>
    %34 = vector.broadcast %33 : vector<2x1xf32> to vector<2x16xf32>
    %35 = arith.addf %32, %34 : vector<2x16xf32>
    %c0_38 = arith.constant 0 : index
    %c0_39 = arith.constant 0 : index
    %36 = vector.load %arg6[%c0_38, %c0_39] : memref<2x16xf32, #tpu.memory_space<vmem>>, vector<2x16xf32>
    tpu.vector_store %arg6[%c0_38, %c0_39], %35 {strides = array<i32>} : memref<2x16xf32, #tpu.memory_space<vmem>>, vector<2x16xf32>,
    return
  }
  func.func @transform_0(%arg0: i32) -> (i32, i32, i32) {
    %c0_i32 = arith.constant 0 : i32
    %c0_i32_0 = arith.constant 0 : i32
    %c0_i32_1 = arith.constant 0 : i32
    return %arg0, %c0_i32, %c0_i32_0 : i32, i32, i32
  }
  func.func @transform_1(%arg0: i32) -> (i32, i32, i32) {
    %c0_i32 = arith.constant 0 : i32
    %c0_i32_0 = arith.constant 0 : i32
    %c0_i32_1 = arith.constant 0 : i32
    %c0_i32_2 = arith.constant 0 : i32
    return %c0_i32, %c0_i32_0, %c0_i32_1 : i32, i32, i32
  }
  func.func @transform_2(%arg0: i32) -> (i32, i32) {
    %c0_i32 = arith.constant 0 : i32
    %c0_i32_0 = arith.constant 0 : i32
    %c0_i32_1 = arith.constant 0 : i32
    return %c0_i32, %c0_i32_0 : i32, i32
  }
  func.func @transform_3(%arg0: i32) -> (i32, i32) {
    %c0_i32 = arith.constant 0 : i32
    %c0_i32_0 = arith.constant 0 : i32
    %c0_i32_1 = arith.constant 0 : i32
    return %c0_i32, %c0_i32_0 : i32, i32
  }
  func.func @transform_4(%arg0: i32) -> (i32, i32) {
    %c0_i32 = arith.constant 0 : i32
    %c0_i32_0 = arith.constant 0 : i32
    %c0_i32_1 = arith.constant 0 : i32
    return %c0_i32, %c0_i32_0 : i32, i32
  }
  func.func @transform_5(%arg0: i32) -> (i32, i32) {
    %c0_i32 = arith.constant 0 : i32
    %c0_i32_0 = arith.constant 0 : i32
    return %c0_i32, %arg0 : i32, i32
  }
}

</mosaic_0001>

<bundles_post_ra>
// kernel: tpu_custom_call.1
= control target key start
LH: loop header
LB: loop body
LE: loop exit
PB: predicated region body
PF: predicated region fallthrough
CT: control target
= control target key end

     0   :  { %vm22_vm0 = vcmask 253952   ;;  %vm23_vm1 = vsmask.f32 256  ;;  %v25_v5 = vld [vmem:[#allocation2] sm:$0x1]  ;;  %vm63_vm5 = vcmask 257024   ;;  %s480_s0 = inlined_call_operand.vmem [shape: f32[2,8,32], index: 0, kind: input, shape index: {}]   ;;  %s481_s1 = inlined_call_operand.vmem [shape: bf16[3,32,8], index: 1, kind: input, shape index: {}]   ;;  %s482_s2 = inlined_call_operand.vmem [shape: f32[1,8], index: 2, kind: input, shape index: {}]   ;;  %s483_s3 = inlined_call_operand.vmem [shape: bf16[2,8], index: 3, kind: input, shape index: {}]   ;;  %s484_s4 = inlined_call_operand.vmem [shape: f32[2,1], index: 4, kind: input, shape index: {}]   ;;  %s485_s5 = inlined_call_operand.hbm [shape: f32[2,16], index: 5, kind: output, shape index: {}]  }
   0x1   :  { %v342_v0 = vld [vmem:[%s481_s1 + $0x8] sm:$0xff]  ;;  %v341_v2 = vld [vmem:[%s481_s1] sm:$0xff]  ;;  %vm421_vm2 = vmand %vm22_vm0, %vm23_vm1  ;;  %vm31_vm3 = vsmask.f32 7938 }
   0x2   :  { %v346_v1 = vld [vmem:[%s481_s1 + $0x28] sm:$0xff]  ;;  %v345_v3 = vld [vmem:[%s481_s1 + $0x20] sm:$0xff]  ;;  %180 = vmatpush.bf16.msra.mxu1 %v342_v0  ;;  %v26_v6 = vsel %vm421_vm2, 0, %v25_v5  ;;  %vm428_vm4 = vmand %vm22_vm0, %vm31_vm3 }
   0x3   :  { %234 = vmatpush.bf16.msra.mxu2 %v346_v1  ;;  %v28_v7 = vld [vmem:[#allocation2 + $0x8] sm:$0x1]  ;;  %v33_v9 = vld [vmem:[#allocation2 + $0x4] sm:$0x1]  ;;  %27 = vst [vmem:[#allocation2] sm:$0x1] %v26_v6 }
   0x4   :  { %v29_v10 = vsel %vm421_vm2, 0, %v28_v7  ;;  %v34_v11 = vsel %vm428_vm4, 0, %v33_v9  ;;  %v36_v12 = vld [vmem:[#allocation2 + $0xc] sm:$0x1]  ;;  %v39_v14 = vld [vmem:[%s480_s0] sm:$0xff]  ;;  %v344_v16 = vld [vmem:[%s481_s1 + $0x18] sm:$0xff] }
   0x5   :  { %30 = vst [vmem:[#allocation2 + $0x8] sm:$0x1] %v29_v10  ;;  %v37_v13 = vsel %vm428_vm4, 0, %v36_v12  ;;  %v40_v15 = vld [vmem:[%s480_s0 + $0x8] sm:$0xff]  ;;  %v41_v17 = vpack.c.bf16 %v39_v14, %v39_v14  ;;  %v343_v19 = vld [vmem:[%s481_s1 + $0x10] sm:$0xff]  ;;  %146 = vmatpush.bf16.msra.mxu0 %v344_v16 }
   0x6   :  { %35 = vst [vmem:[#allocation2 + $0x4] sm:$0x1] %v34_v11  ;;  %v42_v18 = vpack.c.bf16 %v40_v15, %v40_v15  ;;  %181 = vmatpush.bf16.msra.mxu1 %v341_v2 }
   0x7   :  { %235 = vmatpush.bf16.msra.mxu2 %v345_v3  ;;  %38 = vst [vmem:[#allocation2 + $0xc] sm:$0x1] %v37_v13  ;;  %v44_v20 = vshrl.u32 %v41_v17, 16  ;;  %v47_v21 = vshll.u32 %v41_v17, 16 }
   0x8   :  { %v52_v22 = vshrl.u32 %v42_v18, 16  ;;  %v55_v23 = vshll.u32 %v42_v18, 16 }
   0x9   :  { %10 = vsyncpa [#allocation4], 0  ;;  %v46_v24 = vrot.slane %v44_v20, 7  ;;  %147 = vmatpush.bf16.msra.mxu0 %v343_v19  ;;  %vm136_vm7 = vcmask 261120   ;;  %vm194_vm8 = vcmask 1042432   ;;  %vm195_vm9 = vcmask 1046532  }
   0xa   :  { %v54_v25 = vrot.slane %v52_v22, 7  ;;  %vm64_vm6 = vmand %vm63_vm5, %vm31_vm3  ;;  %v65_v26 = vld [vmem:[#allocation2] sm:$0xf]  ;;  %vm85_vm10 = vsmask.f32 3328  ;;  %v377_v15 = vmov 0  }
   0xb   :  { %v49_v27 = vor.u32 %v47_v21, %v46_v24  ;;  %v50_v28 = vrot.slane %v46_v24, 4  ;;  %vm86_vm11 = vsmask.f32 7440  ;;  %vm455_vm12 = vmor %vm194_vm8, %vm195_vm9  ;;  %v254_v14 = vld [vmem:[%s484_s4] sm:$0x3]  ;;  %349 = vset.pattern.permute.xlu0 %v377_v15  ;;  %vm260_vm14 = vcmask 64512  }
   0xc   :  { %v57_v29 = vor.u32 %v55_v23, %v54_v25  ;;  %v58_v30 = vrot.slane %v54_v25, 4  ;;  %v71_v31 = vld [vmem:[#allocation2 + $0x8] sm:$0xf]  ;;  %vm87_vm13 = vmor %vm85_vm10, %vm86_vm11  ;;  %257 = vperm.xlu0 %349, %v254_v14   ;;  %v350_v21 = vld [vmem:[%s482_s2] ss:$0 sm:$0xff]  ;;  %s378_s2 = smov [#allocation3]  }
   0xd   :  { %v68_v32 = vld [vmem:[#allocation2 + $0x4] sm:$0x1]  ;;  %v66_v33 = vsel %vm64_vm6, %v49_v27, %v65_v26  ;;  %s287_s12 = sshll.u32 %s378_s2, 4  ;;  %s289_s15 = sshll.u32 %s485_s5, 4  ;;  %vm280_vm15 = vcmask 123904   ;;  %s288_s12 = int_to_ptr.vmem [resolvable:$true] %s287_s12  ;;  %s290_s15 = int_to_ptr.hbm [resolvable:$true] %s289_s15 }
   0xe   :  { %v72_v34 = vsel %vm64_vm6, %v57_v29, %v71_v31  ;;  %v69_v35 = vsel %vm421_vm2, %v50_v28, %v68_v32  ;;  %v74_v36 = vld [vmem:[#allocation2 + $0xc] sm:$0x1]  ;;  %67 = vst [vmem:[#allocation2] sm:$0xf] %v66_v33  ;;  %v253_v33 = vld [vmem:[%s483_s3] sm:$0x1] }
   0xf   :  { %v75_v37 = vsel %vm421_vm2, %v58_v30, %v74_v36  ;;  %73 = vst [vmem:[#allocation2 + $0x8] sm:$0xf] %v72_v34 }
  0x10   :  { %70 = vst [vmem:[#allocation2 + $0x4] sm:$0x1] %v69_v35 }
  0x11   :  { %76 = vst [vmem:[#allocation2 + $0xc] sm:$0x1] %v75_v37 }
  0x15   :  { %v313_v38 = vld [vmem:[#allocation2] sm:$0xf] }
  0x16   :  { %v188_v39 = vld [vmem:[#allocation2] sm:$0xe]  ;;  %v340_v41 = vld [vmem:[#allocation2 + $0x4] sm:$0xf0] }
  0x17   :  { %v77_v40 = vld [vmem:[#allocation2] sm:$0xf]  ;;  %v189_v42 = vld [vmem:[#allocation2 + $0x8] sm:$0xe]  ;;  %v324_v43 = vrot.slane %v188_v39, 9  ;;  %v314_v45 = vor.u32 %v340_v41, %v313_v38 }
  0x18   :  { %v89_v44 = vshrl.u32 %v77_v40, 16  ;;  %v83_v46 = vld [vmem:[#allocation2 + $0x4] sm:$0x1]  ;;  %v325_v48 = vrot.slane %v189_v42, 9  ;;  %v78_v49 = vld [vmem:[#allocation2 + $0x8] sm:$0xf] }
  0x19   :  { %v92_v50 = vshll.u32 %v77_v40, 16  ;;  %v84_v51 = vld [vmem:[#allocation2 + $0xc] sm:$0x1]  ;;  %v199_v52 = vrot.slane %v83_v46, 5  ;;  %v98_v54 = vshll.u32 %v83_v46, 16  ;;  %v103_v55 = vshrl.u32 %v78_v49, 16  ;;  %323 = vmatmul.msk.bf16.vlgmr.msra.gmra.mxu1 %vm136_vm7, %v314_v45 }
  0x1a   :  { %v91_v53 = vrot.slane %v89_v44, 4  ;;  %v203_v56 = vrot.slane %v84_v51, 5  ;;  %v106_v58 = vshll.u32 %v78_v49, 16  ;;  %v112_v59 = vshll.u32 %v84_v51, 16 }
  0x1b   :  { %v94_v57 = vrot.slane %v92_v50, 5  ;;  %v200_v60 = vsel %vm455_vm12, %v324_v43, %v199_v52  ;;  %v100_v61 = vrot.slane %v98_v54, 5  ;;  %v105_v62 = vrot.slane %v103_v55, 4 }
  0x1c   :  { %v204_v63 = vsel %vm455_vm12, %v325_v48, %v203_v56  ;;  %v210_v0 = vunpack.c.l.b16 %v200_v60  ;;  %v108_v2 = vrot.slane %v106_v58, 5  ;;  %v114_v6 = vrot.slane %v112_v59, 5 }
  0x1d   :  { %v95_v1 = vor.u32 %v94_v57, %v91_v53  ;;  %v211_v3 = vunpack.c.l.b16 %v204_v63 }
  0x1e   :  { %v109_v5 = vor.u32 %v108_v2, %v105_v62 }
  0x1f   :  { %v96_v4 = vrot.slane %v95_v1, 4  ;;  %v212_v7 = vpack.c.b16 %v211_v3, %v210_v0 }
  0x20   :  { %v110_v9 = vrot.slane %v109_v5, 4 }
  0x21   :  { %v101_v8 = vsel %vm87_vm13, %v96_v4, %v100_v61  ;;  %338 = vmatmul.msk.bf16.vlgmr.msra.gmra.mxu2 %vm136_vm7, %v212_v7 }
  0x22   :  { %v121_v10 = vunpack.c.l.b16 %v101_v8  ;;  %v115_v11 = vsel %vm87_vm13, %v110_v9, %v114_v6 }
  0x23   :  { %v122_v12 = vunpack.c.l.b16 %v115_v11 }
  0x25   :  { %v123_v13 = vpack.c.b16 %v122_v12, %v121_v10 }
  0x27   :  { %310 = vmatmul.msk.bf16.vlgmr.msra.gmra.mxu0 %vm136_vm7, %v123_v13 }
  0x7e   :  { %v258_v34 = vpop.permute.xlu0 %257 }
  0x96   :  { %v183_v16 = vpop.f32.mrf.mxu1 }
  0x9e   :  { %v185_v22 = vpop.f32.mrf.mxu1 }
  0xa4   :  { %v149_v17 = vpop.f32.mrf.mxu0  ;;  %v237_v18 = vpop.f32.mrf.mxu2 }
  0xa5   :  { %v184_v19 = vadd.f32 %v183_v16, %v149_v17 }
  0xa7   :  { %v242_v20 = vadd.f32 %v237_v18, %v184_v19 }
  0xa9   :  { %v248_v26 = vadd.f32 %v350_v21, %v242_v20 }
  0xab   :  { %v250_v29 = vmax.f32 %v248_v26, 0.0 }
  0xac   :  { %v151_v23 = vpop.f32.mrf.mxu0  ;;  %v239_v25 = vpop.f32.mrf.mxu2 }
  0xad   :  { %v186_v24 = vadd.f32 %v185_v22, %v151_v23 }
  0xaf   :  { %v243_v27 = vadd.f32 %v239_v25, %v186_v24 }
  0xb1   :  { %v249_v28 = vadd.f32 %v350_v21, %v243_v27 }
  0xb3   :  { %v251_v30 = vmax.f32 %v249_v28, 0.0 }
  0xb5   :  { %v252_v31 = vpack.c.bf16 %v251_v30, %v250_v29 }
  0xb7   :  { %v265_v32 = vsel %vm260_vm14, %v252_v31, 0 }
  0xb8   :  { %274 = vmatpush.bf16.xpose.msra.mxu3 %v265_v32 }
  0xbf   :  { %339 = vmatmul.msk.bf16.vlgmr.msra.gmra.mxu3 %vm260_vm14, %v253_v33 }
 0x142   :  { %v276_v35 = vpop.f32.mrf.mxu3 }
 0x143   :  { %v277_v36 = vadd.f32 %v276_v35, %v258_v34 }
 0x145   :  { %281 = vst.msk [vmem:[#allocation3] sm:$0x3] %vm280_vm15, %v277_v36 }
 0x146   :  { %292 = dma.vmem_to_hbm [thread:$0]  %s288_s12, 32, %s290_s15, [#allocation4]  }
 0x14a   :  { %v278_v37 = vpop.f32.mrf.mxu3 }
 0x14b   :  { %375 = dma.done.wait [#allocation4], 32  }
 0x14c   :  { %376 = vsyncadd [#allocation4], 4294967264 }
 0x14d   :  { %297 = vsyncpa [#allocation4], 1 }

</bundles_post_ra>
